<compile_context>
chip_gen: v7x
topology: tpu7x:2x2x1
jax: 0.10.0
libtpu: 0.0.40
codegen_flags: <defaults>
</compile_context>

<pallas_src>
import jax
import jax.numpy as jnp
from jax.experimental import pallas as pl
from jax.experimental.pallas import tpu as pltpu


def add_pe_kernel(x_ref, pe_ref, o_ref):
    # x_ref: [bb, tdc]; pe_ref: [1, tdc] broadcast over the batch rows.
    o_ref[...] = x_ref[...] + pe_ref[...]


def _sublane_pack(dtype):
    # sublane packing: 8 for 32-bit, 16 for 16-bit, 32 for 8-bit dtypes
    return {2: 16, 1: 32}.get(jnp.dtype(dtype).itemsize, 8)


def _target_tile_bytes():
    # v7x: ~3.2 TB/s HBM -> bigger tiles keep per-step overhead <10%.
    # v5e/v6e: ~0.8-1.4 TB/s, ~4 MiB already sits at the HBM roofline.
    try:
        kind = jax.devices()[0].device_kind.lower()
    except Exception:
        kind = ""
    return 8 * 1024 * 1024 if "v7" in kind else 4 * 1024 * 1024


def _pick_batch_block(B, pack, target_rows):
    """Batch block: multiple of `pack` (or full B), dividing B when possible,
    and >= 2 grid steps when B allows so both v7x TensorCores get work."""
    if B <= pack:
        return B
    t = max(pack, min(B, (target_rows // pack) * pack))
    if t >= B and B >= 2 * pack:
        # whole batch would fit one tile: split so the parallel axis has >=2 steps
        t = -(-((B + 1) // 2) // pack) * pack
        t = min(t, B)
    # prefer a block that divides B evenly (no ragged / masked tail block)
    for cand in range(t, pack - 1, -pack):
        if B % cand == 0:
            return cand
    return t


def _pick_td_block(TD, bb, itemsize, target_bytes):
    """Lane-axis block: full TD when it fits the tile target, otherwise a
    128-multiple divisor of TD so VMEM stays bounded and stores stay unmasked."""
    if TD % 128 != 0:
        # Full-row block (block dim == array dim is legal).  Padding TD to a
        # 128-multiple would cost an extra full HBM pass over x, which is worse
        # for a memory-bound add than a few masked edge stores.
        return TD
    if bb * TD * itemsize <= target_bytes:
        return TD
    lanes = TD // 128
    want = max(1, target_bytes // (bb * 128 * itemsize))
    c = min(want, lanes)
    while c > 1 and lanes % c != 0:
        c -= 1
    return c * 128


def gaussian_position_forward(x, var_position, var_mu, var_sigma, var_embedding,
                              *, donate_x=False):
    """x: [B, T, D]; position: [T, K]; mu/sigma: [1, K]; embedding: [K, D]."""
    B, T, D = x.shape
    TD = T * D
    itemsize = jnp.dtype(x.dtype).itemsize

    # 1) batch-invariant pe (T*K*D FLOPs, K ~ 10): plain jnp, fused by XLA.
    pdf = var_position - var_mu
    pdf = -(pdf * pdf)
    pdf = pdf / var_sigma / var_sigma / 2.0
    pdf = pdf - jnp.log(var_sigma)
    pdf = jax.nn.softmax(pdf, axis=-1)
    pe = jnp.dot(pdf, var_embedding).astype(x.dtype)       # [T, D]

    # 2) lane-dense broadcast add on flattened [B, T*D].
    x2 = x.reshape(B, TD)
    pe2 = pe.reshape(1, TD)

    pack = _sublane_pack(x.dtype)
    target = _target_tile_bytes()
    row_bytes = TD * itemsize
    target_rows = max(1, target // row_bytes)

    bb = _pick_batch_block(B, pack, target_rows)
    tdc = _pick_td_block(TD, bb, itemsize, target)
    grid = (pl.cdiv(B, bb), pl.cdiv(TD, tdc))

    out2 = pl.pallas_call(
        add_pe_kernel,
        out_shape=jax.ShapeDtypeStruct((B, TD), x.dtype),
        grid_spec=pltpu.PrefetchScalarGridSpec(
            num_scalar_prefetch=0,
            grid=grid,
            in_specs=[
                pl.BlockSpec((bb, tdc), lambda i, j: (i, j)),   # x (flattened)
                pl.BlockSpec((1, tdc), lambda i, j: (0, j)),    # pe (broadcast)
            ],
            out_specs=pl.BlockSpec((bb, tdc), lambda i, j: (i, j)),
        ),
        compiler_params=pltpu.CompilerParams(
            dimension_semantics=("parallel", "parallel"),
            vmem_limit_bytes=48 * 1024 * 1024),
        input_output_aliases=({0: 0} if donate_x else {}),
    )(x2, pe2)

    return out2.reshape(B, T, D)


def init_gaussian_position_params(key, var_dim_feature, var_dim_time,
                                  var_num_gaussian=10):
    """Deterministic parameter construction mirroring the PyTorch __init__."""
    K, D, T = var_num_gaussian, var_dim_feature, var_dim_time

    # torch.nn.init.xavier_uniform_ on [K, D]
    bound = jnp.sqrt(6.0 / (K + D))
    var_embedding = jax.random.uniform(
        key, (K, D), dtype=jnp.float32, minval=-bound, maxval=bound)

    # arange(0, T).unsqueeze(1).repeat(1, K)  -> [T, K]
    var_position = jnp.tile(
        jnp.arange(0.0, T, dtype=jnp.float32)[:, None], (1, K))

    # arange(0, T, T/K).unsqueeze(0) -> [1, K]
    var_mu = jnp.arange(0.0, T, T / K, dtype=jnp.float32)[None, :K]

    # tensor([50.0]*K).unsqueeze(0) -> [1, K]
    var_sigma = jnp.full((1, K), 50.0, dtype=jnp.float32)

    return var_position, var_mu, var_sigma, var_embedding


def gaussian_position_ref(x, var_position, var_mu, var_sigma, var_embedding):
    """Pure-JAX reference for correctness checking."""
    pdf = var_position - var_mu
    pdf = -pdf * pdf
    pdf = pdf / var_sigma / var_sigma / 2.0
    pdf = pdf - jnp.log(var_sigma)
    pdf = jax.nn.softmax(pdf, axis=-1)
    pe = pdf @ var_embedding
    return x + pe[None]


if __name__ == "__main__":
    B, T, D, K = 2, 8, 32, 10  # batch, time (var_dim_time), feature, gaussians

    key = jax.random.PRNGKey(0)
    k_emb, k_x = jax.random.split(key)

    var_position, var_mu, var_sigma, var_embedding = \
        init_gaussian_position_params(k_emb, var_dim_feature=D,
                                      var_dim_time=T, var_num_gaussian=K)

    x = jax.random.normal(k_x, (B, T, D), dtype=jnp.float32)

    out = gaussian_position_forward(x, var_position, var_mu, var_sigma,
                                    var_embedding)
    out = jax.block_until_ready(out)

    ref = gaussian_position_ref(x, var_position, var_mu, var_sigma,
                                var_embedding)
    assert out.shape == (B, T, D)
    assert jnp.allclose(out, ref, atol=1e-5, rtol=1e-5), \
        f"max err {jnp.max(jnp.abs(out - ref))}"

    print("KERNEL_OK")
</pallas_src>

<mosaic_0001>
module attributes {stable_mosaic.version = 11 : i64} {
  func.func @add_pe_kernel(%arg0: i32, %arg1: i32, %arg2: memref<2x256xf32, #tpu.memory_space<vmem>>, %arg3: memref<1x256xf32, #tpu.memory_space<vmem>>, %arg4: memref<2x256xf32, #tpu.memory_space<vmem>>) attributes {dimension_semantics = [#tpu.dimension_semantics<parallel>, #tpu.dimension_semantics<parallel>], iteration_bounds = array<i64: 1, 1>, scalar_prefetch = 0 : i64, scratch_operands = 0 : i64, tpu.core_type = #tpu.core_type<tc>, window_params = [{transform_indices = @transform_0, window_bounds = array<i64: 2, 256>}, {transform_indices = @transform_1, window_bounds = array<i64: 1, 256>}, {transform_indices = @transform_2, window_bounds = array<i64: 2, 256>}]} {
    %c0 = arith.constant 0 : index
    %c0_0 = arith.constant 0 : index
    %0 = vector.load %arg2[%c0, %c0_0] : memref<2x256xf32, #tpu.memory_space<vmem>>, vector<2x256xf32>
    %c0_1 = arith.constant 0 : index
    %c0_2 = arith.constant 0 : index
    %1 = vector.load %arg3[%c0_1, %c0_2] : memref<1x256xf32, #tpu.memory_space<vmem>>, vector<1x256xf32>
    %2 = vector.broadcast %1 : vector<1x256xf32> to vector<2x256xf32>
    %3 = arith.addf %0, %2 : vector<2x256xf32>
    %c0_3 = arith.constant 0 : index
    %c0_4 = arith.constant 0 : index
    %4 = vector.load %arg4[%c0_3, %c0_4] : memref<2x256xf32, #tpu.memory_space<vmem>>, vector<2x256xf32>
    tpu.vector_store %arg4[%c0_3, %c0_4], %3 {strides = array<i32>} : memref<2x256xf32, #tpu.memory_space<vmem>>, vector<2x256xf32>,
    return
  }
  func.func @transform_0(%arg0: i32, %arg1: i32) -> (i32, i32) {
    %c0_i32 = arith.constant 0 : i32
    return %arg0, %arg1 : i32, i32
  }
  func.func @transform_1(%arg0: i32, %arg1: i32) -> (i32, i32) {
    %c0_i32 = arith.constant 0 : i32
    %c0_i32_0 = arith.constant 0 : i32
    return %c0_i32, %arg1 : i32, i32
  }
  func.func @transform_2(%arg0: i32, %arg1: i32) -> (i32, i32) {
    %c0_i32 = arith.constant 0 : i32
    return %arg0, %arg1 : i32, i32
  }
}

</mosaic_0001>

<bundles_post_ra>
// kernel: tpu_custom_call.1
= control target key start
LH: loop header
LB: loop body
LE: loop exit
PB: predicated region body
PF: predicated region fallthrough
CT: control target
= control target key end

     0   :  { %7 = vsyncpa [#allocation3], 0  ;;  %s157_s0 = inlined_call_operand.hbm [shape: f32[2,256], index: 0, kind: input, shape index: {}]   ;;  %s158_s1 = inlined_call_operand.vmem [shape: f32[1,256], index: 1, kind: input, shape index: {}]   ;;  %s159_s2 = inlined_call_operand.hbm [shape: f32[2,256], index: 2, kind: output, shape index: {}]  }
   0x1   :  { %8 = vsyncpa [#allocation4], 0  ;;  %s112_s9 = smov [#allocation2]   ;;  %s64_s13 = scalar_lea.hbm %s157_s0, 64 }
   0x2   :  { %s15_s10 = sshll.u32 %s112_s9, 4  ;;  %p65_p0 = scmp.ne.s32.totalorder %s157_s0, %s64_s13  ;;  %s16_s10 = int_to_ptr.vmem [resolvable:$true] %s15_s10 }
   0x3   :  { %p68_p1 = scmp.lt.u32.totalorder %s64_s13, %s157_s0 }
   0x5   :  { %p70_p2 = pnand %p68_p1, %p65_p0 }
   0x7   :  { %73 = shalt.err (!%p70_p2)
}
   0x8   :  { %s74_s18 = scalar_lea.vmem %s16_s10, 64  ;;  %p79_p4 = scmp.lt.s32.totalorder %s16_s10, %s16_s10 }
   0x9   :  { %p75_p3 = scmp.ne.s32.totalorder %s16_s10, %s74_s18  ;;  %p80_p5 = scmp.lt.s32.totalorder %s74_s18, %s74_s18 }
   0xb   :  { %p81_p6 = por %p80_p5, %p79_p4 }
   0xd   :  { %p82_p7 = pnand %p81_p6, %p75_p3 }
   0xf   :  { %85 = shalt.err (!%p82_p7)
}
  0x10   :  { %18 = dma.hbm_to_vmem [thread:$0]  %s157_s0, 64, %s16_s10, [#allocation3]  }
  0x11   :  { %108 = dma.done.wait [#allocation3], 64  }
  0x12   :  { %109 = vsyncadd [#allocation3], 4294967232  ;;  %v27_v0 = vlaneseq  ;;  %v113_v1 = vmov 1983009808   ;;  %v25_v7 = vld [vmem:[%s158_s1] sm:$0x3] }
  0x13   :  { %v37_v2 = vunpack.c.l.s4 %v113_v1  ;;  %v24_v12 = vld [vmem:[#allocation2] sm:$0xf]  ;;  %s114_s23 = smov [#allocation5]  }
  0x14   :  { %v28_v3 = vshrl.u32 %v27_v0, 7  ;;  %s52_s0 = sshll.u32 %s114_s23, 4  ;;  %s53_s0 = int_to_ptr.vmem [resolvable:$true] %s52_s0 }
  0x15   :  { %v38_v6 = vunpack.c.0.s8 %v37_v2  ;;  %s86_s24 = scalar_lea.vmem %s53_s0, 64  ;;  %p91_p9 = scmp.lt.s32.totalorder %s53_s0, %s53_s0 }
  0x16   :  { %v29_v4 = vsub.s32 0, %v28_v3  ;;  %v33_v5 = vsub.s32 1, %v28_v3  ;;  %p87_p8 = scmp.ne.s32.totalorder %s53_s0, %s86_s24  ;;  %p92_p10 = scmp.lt.s32.totalorder %s86_s24, %s86_s24 }
  0x17   :  { %v41_v10 = vsub.s32 %v38_v6, %v28_v3 }
  0x18   :  { %v30_v8 = vrot.slane %v25_v7, %v29_v4  ;;  %v34_v9 = vrot.slane %v25_v7, %v33_v5  ;;  %p93_p11 = por %p92_p10, %p91_p9 }
  0x1a   :  { %v35_v11 = vcombine.low %v30_v8, %v34_v9  ;;  %p94_p12 = pnand %p93_p11, %p87_p8 }
  0x1c   :  { %v42_v13 = vrot.slane %v35_v11, %v41_v10 }
  0x1e   :  { %v44_v14 = vadd.f32 %v42_v13, %v24_v12 }
  0x20   :  { %45 = vst [vmem:[#allocation5] sm:$0xf] %v44_v14 }
  0x21   :  { %97 = shalt.err (!%p94_p12)
}
  0x22   :  { %s98_s26 = scalar_lea.hbm %s159_s2, 64 }
  0x23   :  { %p99_p13 = scmp.ne.s32.totalorder %s159_s2, %s98_s26  ;;  %p102_p0 = scmp.lt.u32.totalorder %s98_s26, %s159_s2 }
  0x25   :  { %p104_p1 = pnand %p102_p0, %p99_p13 }
  0x27   :  { %107 = shalt.err (!%p104_p1)
}
  0x28   :  { %55 = dma.vmem_to_hbm [thread:$0]  %s53_s0, 64, %s159_s2, [#allocation4]  }
  0x29   :  { %110 = dma.done.wait [#allocation4], 64  }
  0x2a   :  { %111 = vsyncadd [#allocation4], 4294967232 }
  0x2b   :  { %59 = vsyncpa [#allocation3], 1 }
  0x2c   :  { %60 = vsyncpa [#allocation4], 1 }

</bundles_post_ra>
